<compile_context>
chip_gen: v7x
topology: tpu7x:2x2x1
jax: 0.10.0
libtpu: 0.0.40
codegen_flags: <defaults>
</compile_context>

<pallas_src>
import jax
import jax.numpy as jnp
from jax import lax
from jax.experimental import pallas as pl

NEG_SLOPE = 0.01      # nn.LeakyReLU default
COS_EPS = 1e-8        # torch.cosine_similarity default eps
MASK_FILL = 1e-9


def _leaky_relu(x):
    return jnp.where(x >= 0, x, NEG_SLOPE * x)


def _round_up(x, m):
    return (x + m - 1) // m * m


def _pad_to(x, shape):
    return jnp.pad(x, [(0, s - d) for d, s in zip(x.shape, shape)])


def attention_kernel(src_ref, tgt_ref, mask_ref,
                     wq_ref, bq_ref, wkv_ref, bkv_ref,
                     wm_ref, bm_ref, wm1_ref, bm1_ref,
                     qout_ref, atted_ref, attmap_ref):
    # src_ref : (B, Dp)       tgt_ref : (B*T, Dp)     mask_ref : (B, T, 1) int32
    # weights : lane-padded   outputs : q_out (B,Dp), atted (B*T,Dp), att_map (B,1,T)
    B, _ = src_ref.shape
    BT = tgt_ref.shape[0]
    T = BT // B
    Hp = wq_ref.shape[1]

    s = src_ref[...]                                   # (B, Dp)
    t = tgt_ref[...]                                   # (B*T, Dp)

    # --- projections (Linear + LeakyReLU); K|V fused into one MXU matmul ---
    q = _leaky_relu(jnp.dot(s, wq_ref[...], preferred_element_type=jnp.float32)
                    + bq_ref[...])                     # (B, Hp)
    kv = _leaky_relu(jnp.dot(t, wkv_ref[...], preferred_element_type=jnp.float32)
                     + bkv_ref[...])                   # (B*T, 2*Hp)
    k3 = kv[:, :Hp].reshape(B, T, Hp)                  # (B, T, Hp)
    v3 = kv[:, Hp:].reshape(B, T, Hp)                  # (B, T, Hp)
    q3 = q[:, None, :]                                 # (B, 1, Hp)

    # --- cosine_similarity(query, key, dim=-1); rsqrt runs on the EUP ---
    # Lane reductions stay on the VPU: at Hp=128 they co-issue nearly free.
    w12 = jnp.sum(q3 * k3, axis=-1, keepdims=True)     # (B, T, 1)
    w1 = jnp.sum(q3 * q3, axis=-1, keepdims=True)      # (B, 1, 1)
    w2 = jnp.sum(k3 * k3, axis=-1, keepdims=True)      # (B, T, 1)
    att = w12 * lax.rsqrt(jnp.maximum(w1 * w2, COS_EPS * COS_EPS))

    # masked_fill(mask, 1e-9)
    att = jnp.where(mask_ref[...] != 0, MASK_FILL, att)  # (B, T, 1)

    # --- atted = att_map.permute(0,2,1) * value, then the two merges (MXU) ---
    atted_pre = (att * v3).reshape(BT, Hp)             # (B*T, Hp)
    atted_ref[...] = _leaky_relu(
        jnp.dot(atted_pre, wm_ref[...], preferred_element_type=jnp.float32)
        + bm_ref[...])                                 # (B*T, Dp)
    qout_ref[...] = _leaky_relu(
        jnp.dot(q, wm1_ref[...], preferred_element_type=jnp.float32)
        + bm1_ref[...])                                # (B, Dp)

    # --- att_map output, lane-major (T on the lane axis) ---
    # Exact sublane->lane transpose of the (T,1) column: broadcast against an
    # identity mask and reduce over the sublane axis (no generic relayout,
    # bit-identical to `att`).
    rows = lax.broadcasted_iota(jnp.int32, (T, T), 0)
    cols = lax.broadcasted_iota(jnp.int32, (T, T), 1)
    eye = (rows == cols).astype(jnp.float32)           # (T, T)
    attmap_ref[...] = jnp.sum(att * eye[None, :, :], axis=1, keepdims=True)  # (B,1,T)


def attention_forward(source, target, mask, params):
    """Pallas implementation of Attention.forward(source, target, mask)."""
    B, D_in = source.shape
    _, T, _ = target.shape
    H = params["wq"].shape[1]
    Dp = _round_up(D_in, 128)
    Hp = _round_up(H, 128)

    # lane-dense, batch-flattened operands
    src_p = _pad_to(source, (B, Dp))
    tgt_p = _pad_to(target.reshape(B * T, D_in), (B * T, Dp))
    mask_col = mask.astype(jnp.int32).reshape(B, T, 1)        # (B,1,T) -> (B,T,1)

    wq = _pad_to(params["wq"], (Dp, Hp))
    bq = _pad_to(params["bq"], (1, Hp))
    wkv = jnp.concatenate([_pad_to(params["wk"], (Dp, Hp)),
                           _pad_to(params["wv"], (Dp, Hp))], axis=1)   # (Dp, 2Hp)
    bkv = jnp.concatenate([_pad_to(params["bk"], (1, Hp)),
                           _pad_to(params["bv"], (1, Hp))], axis=1)    # (1, 2Hp)
    wm = _pad_to(params["wm"], (Hp, Dp))
    bm = _pad_to(params["bm"], (1, Dp))
    wm1 = _pad_to(params["wm1"], (Hp, Dp))
    bm1 = _pad_to(params["bm1"], (1, Dp))

    # Single invocation, no grid: every operand is a whole-array VMEM block
    # (total footprint ~0.4 MiB, far under every generation's VMEM budget).
    q_out, atted, att_map = pl.pallas_call(
        attention_kernel,
        out_shape=(
            jax.ShapeDtypeStruct((B, Dp), jnp.float32),        # q_out (padded)
            jax.ShapeDtypeStruct((B * T, Dp), jnp.float32),    # atted (padded)
            jax.ShapeDtypeStruct((B, 1, T), jnp.float32),      # att_map, T on lanes
        ),
    )(src_p, tgt_p, mask_col,
      wq, bq, wkv, bkv, wm, bm, wm1, bm1)

    return (q_out[:, :D_in],
            atted[:, :D_in].reshape(B, T, D_in),
            att_map.reshape(B, T))


def reference_forward(source, target, mask, params):
    """Pure-JAX oracle mirroring the PyTorch forward."""
    q = _leaky_relu(source @ params["wq"] + params["bq"])          # (B, H)
    k = _leaky_relu(target @ params["wk"] + params["bk"])          # (B, T, H)
    v = _leaky_relu(target @ params["wv"] + params["bv"])          # (B, T, H)
    q3 = q[:, None, :]
    w12 = jnp.sum(q3 * k, -1)
    w1 = jnp.sum(q3 * q3, -1)
    w2 = jnp.sum(k * k, -1)
    # NOTE: eps handling (sqrt(max(||q||^2*||k||^2, eps^2))) matches the kernel;
    # torch clamps each norm separately -- differs only for near-zero-norm rows.
    att = w12 / jnp.sqrt(jnp.maximum(w1 * w2, COS_EPS * COS_EPS))  # (B, T)
    att = jnp.where(mask[:, 0, :], MASK_FILL, att)                 # masked_fill
    atted = att[:, :, None] * v                                    # (B, T, H)
    atted = _leaky_relu(atted @ params["wm"] + params["bm"])       # (B, T, D_in)
    q_out = _leaky_relu(q @ params["wm1"] + params["bm1"])         # (B, D_in)
    return q_out, atted, att


def init_params(key, in_dim, hid_dim):
    ks = jax.random.split(key, 10)
    scale_in = 1.0 / jnp.sqrt(in_dim)
    scale_h = 1.0 / jnp.sqrt(hid_dim)
    return dict(
        wq=jax.random.normal(ks[0], (in_dim, hid_dim), jnp.float32) * scale_in,
        bq=jax.random.normal(ks[1], (1, hid_dim), jnp.float32) * 0.01,
        wk=jax.random.normal(ks[2], (in_dim, hid_dim), jnp.float32) * scale_in,
        bk=jax.random.normal(ks[3], (1, hid_dim), jnp.float32) * 0.01,
        wv=jax.random.normal(ks[4], (in_dim, hid_dim), jnp.float32) * scale_in,
        bv=jax.random.normal(ks[5], (1, hid_dim), jnp.float32) * 0.01,
        wm=jax.random.normal(ks[6], (hid_dim, in_dim), jnp.float32) * scale_h,
        bm=jax.random.normal(ks[7], (1, in_dim), jnp.float32) * 0.01,
        wm1=jax.random.normal(ks[8], (hid_dim, in_dim), jnp.float32) * scale_h,
        bm1=jax.random.normal(ks[9], (1, in_dim), jnp.float32) * 0.01,
    )


if __name__ == "__main__":
    B, T, IN_DIM, HID_DIM = 2, 8, 32, 32

    key = jax.random.PRNGKey(0)
    k_src, k_tgt, k_par = jax.random.split(key, 3)

    source = jax.random.normal(k_src, (B, IN_DIM), jnp.float32)
    target = jax.random.normal(k_tgt, (B, T, IN_DIM), jnp.float32)
    # zero one target row so make_mask actually masks something
    target = target.at[1, 3, :].set(0.0)
    # make_mask semantics: rows of `target` whose abs-sum is 0 are masked.
    mask = (jnp.sum(jnp.abs(target), axis=-1) == 0)[:, None, :]    # (B, 1, T) bool

    params = init_params(k_par, IN_DIM, HID_DIM)

    q_out, atted, att_map = attention_forward(source, target, mask, params)
    jax.block_until_ready((q_out, atted, att_map))

    q_ref, atted_ref, att_ref = reference_forward(source, target, mask, params)

    assert q_out.shape == (B, IN_DIM)
    assert atted.shape == (B, T, IN_DIM)
    assert att_map.shape == (B, T)
    assert jnp.allclose(q_out, q_ref, atol=1e-5, rtol=1e-4)
    assert jnp.allclose(atted, atted_ref, atol=1e-5, rtol=1e-4)
    assert jnp.allclose(att_map, att_ref, atol=1e-5, rtol=1e-4)

    print("KERNEL_OK")
</pallas_src>

<mosaic_0001>
module attributes {stable_mosaic.version = 11 : i64} {
  func.func @attention_kernel(%arg0: memref<2x128xf32, #tpu.memory_space<vmem>>, %arg1: memref<16x128xf32, #tpu.memory_space<vmem>>, %arg2: memref<2x8x1xi32, #tpu.memory_space<vmem>>, %arg3: memref<128x128xf32, #tpu.memory_space<vmem>>, %arg4: memref<1x128xf32, #tpu.memory_space<vmem>>, %arg5: memref<128x256xf32, #tpu.memory_space<vmem>>, %arg6: memref<1x256xf32, #tpu.memory_space<vmem>>, %arg7: memref<128x128xf32, #tpu.memory_space<vmem>>, %arg8: memref<1x128xf32, #tpu.memory_space<vmem>>, %arg9: memref<128x128xf32, #tpu.memory_space<vmem>>, %arg10: memref<1x128xf32, #tpu.memory_space<vmem>>, %arg11: memref<2x128xf32, #tpu.memory_space<vmem>>, %arg12: memref<16x128xf32, #tpu.memory_space<vmem>>, %arg13: memref<2x1x8xf32, #tpu.memory_space<vmem>>) attributes {dimension_semantics = [], scalar_prefetch = 0 : i64, scratch_operands = 0 : i64, tpu.core_type = #tpu.core_type<tc>} {
    %c0 = arith.constant 0 : index
    %c0_0 = arith.constant 0 : index
    %0 = vector.load %arg0[%c0, %c0_0] : memref<2x128xf32, #tpu.memory_space<vmem>>, vector<2x128xf32>
    %c0_1 = arith.constant 0 : index
    %c0_2 = arith.constant 0 : index
    %1 = vector.load %arg1[%c0_1, %c0_2] : memref<16x128xf32, #tpu.memory_space<vmem>>, vector<16x128xf32>
    %c0_3 = arith.constant 0 : index
    %c0_4 = arith.constant 0 : index
    %2 = vector.load %arg3[%c0_3, %c0_4] : memref<128x128xf32, #tpu.memory_space<vmem>>, vector<128x128xf32>
    %cst = arith.constant dense<0.000000e+00> : vector<2x128xf32>
    %3 = tpu.matmul %0, %2, %cst {dimension_numbers = #tpu.dot_dimension_numbers<[1], [0], [0], [1], [0, 0, 1, 1], [], []>} : vector<2x128xf32>, vector<128x128xf32>, vector<2x128xf32> -> vector<2x128xf32>
    %c0_5 = arith.constant 0 : index
    %c0_6 = arith.constant 0 : index
    %4 = vector.load %arg4[%c0_5, %c0_6] : memref<1x128xf32, #tpu.memory_space<vmem>>, vector<1x128xf32>
    %5 = vector.broadcast %4 : vector<1x128xf32> to vector<2x128xf32>
    %6 = arith.addf %3, %5 : vector<2x128xf32>
    %cst_7 = arith.constant 0.000000e+00 : f32
    %7 = vector.broadcast %cst_7 : f32 to vector<2x128xf32>
    %8 = arith.cmpf oge, %6, %7 : vector<2x128xf32>
    %cst_8 = arith.constant 0.00999999977 : f32
    %9 = vector.broadcast %cst_8 : f32 to vector<2x128xf32>
    %10 = arith.mulf %9, %6 : vector<2x128xf32>
    %11 = arith.select %8, %6, %10 : vector<2x128xi1>, vector<2x128xf32>
    %c0_9 = arith.constant 0 : index
    %c0_10 = arith.constant 0 : index
    %12 = vector.load %arg5[%c0_9, %c0_10] : memref<128x256xf32, #tpu.memory_space<vmem>>, vector<128x256xf32>
    %cst_11 = arith.constant dense<0.000000e+00> : vector<16x256xf32>
    %13 = tpu.matmul %1, %12, %cst_11 {dimension_numbers = #tpu.dot_dimension_numbers<[1], [0], [0], [1], [0, 0, 1, 1], [], []>} : vector<16x128xf32>, vector<128x256xf32>, vector<16x256xf32> -> vector<16x256xf32>
    %c0_12 = arith.constant 0 : index
    %c0_13 = arith.constant 0 : index
    %14 = vector.load %arg6[%c0_12, %c0_13] : memref<1x256xf32, #tpu.memory_space<vmem>>, vector<1x256xf32>
    %15 = vector.broadcast %14 : vector<1x256xf32> to vector<16x256xf32>
    %16 = arith.addf %13, %15 : vector<16x256xf32>
    %cst_14 = arith.constant 0.000000e+00 : f32
    %17 = vector.broadcast %cst_14 : f32 to vector<16x256xf32>
    %18 = arith.cmpf oge, %16, %17 : vector<16x256xf32>
    %cst_15 = arith.constant 0.00999999977 : f32
    %19 = vector.broadcast %cst_15 : f32 to vector<16x256xf32>
    %20 = arith.mulf %19, %16 : vector<16x256xf32>
    %21 = arith.select %18, %16, %20 : vector<16x256xi1>, vector<16x256xf32>
    %22 = vector.extract_strided_slice %21 {offsets = [0, 0], sizes = [16, 128], strides = [1, 1]} : vector<16x256xf32> to vector<16x128xf32>
    %23 = vector.shape_cast %22 : vector<16x128xf32> to vector<2x8x128xf32>
    %24 = vector.extract_strided_slice %21 {offsets = [0, 128], sizes = [16, 128], strides = [1, 1]} : vector<16x256xf32> to vector<16x128xf32>
    %25 = vector.shape_cast %24 : vector<16x128xf32> to vector<2x8x128xf32>
    %26 = vector.shape_cast %11 : vector<2x128xf32> to vector<2x1x128xf32>
    %27 = vector.broadcast %26 : vector<2x1x128xf32> to vector<2x8x128xf32>
    %28 = arith.mulf %27, %23 : vector<2x8x128xf32>
    %cst_16 = arith.constant dense<0.000000e+00> : vector<2x8xf32>
    %29 = vector.multi_reduction <add>, %28, %cst_16 [2] : vector<2x8x128xf32> to vector<2x8xf32>
    %30 = vector.shape_cast %29 : vector<2x8xf32> to vector<2x8x1xf32>
    %31 = arith.mulf %26, %26 : vector<2x1x128xf32>
    %cst_17 = arith.constant dense<0.000000e+00> : vector<2x1xf32>
    %32 = vector.multi_reduction <add>, %31, %cst_17 [2] : vector<2x1x128xf32> to vector<2x1xf32>
    %33 = vector.shape_cast %32 : vector<2x1xf32> to vector<2x1x1xf32>
    %34 = arith.mulf %23, %23 : vector<2x8x128xf32>
    %cst_18 = arith.constant dense<0.000000e+00> : vector<2x8xf32>
    %35 = vector.multi_reduction <add>, %34, %cst_18 [2] : vector<2x8x128xf32> to vector<2x8xf32>
    %36 = vector.shape_cast %35 : vector<2x8xf32> to vector<2x8x1xf32>
    %37 = vector.broadcast %33 : vector<2x1x1xf32> to vector<2x8x1xf32>
    %38 = arith.mulf %37, %36 : vector<2x8x1xf32>
    %cst_19 = arith.constant 1.000000e-16 : f32
    %39 = vector.broadcast %cst_19 : f32 to vector<2x8x1xf32>
    %40 = arith.maximumf %38, %39 : vector<2x8x1xf32>
    %41 = math.rsqrt %40 : vector<2x8x1xf32>
    %42 = arith.mulf %30, %41 : vector<2x8x1xf32>
    %c0_20 = arith.constant 0 : index
    %c0_21 = arith.constant 0 : index
    %c0_22 = arith.constant 0 : index
    %43 = vector.load %arg2[%c0_20, %c0_21, %c0_22] : memref<2x8x1xi32, #tpu.memory_space<vmem>>, vector<2x8x1xi32>
    %c0_i32 = arith.constant 0 : i32
    %44 = vector.broadcast %c0_i32 : i32 to vector<2x8x1xi32>
    %45 = arith.cmpi ne, %43, %44 : vector<2x8x1xi32>
    %cst_23 = arith.constant 9.99999971E-10 : f32
    %46 = vector.broadcast %cst_23 : f32 to vector<2x8x1xf32>
    %47 = arith.select %45, %46, %42 : vector<2x8x1xi1>, vector<2x8x1xf32>
    %48 = vector.broadcast %47 : vector<2x8x1xf32> to vector<2x8x128xf32>
    %49 = arith.mulf %48, %25 : vector<2x8x128xf32>
    %50 = vector.shape_cast %49 : vector<2x8x128xf32> to vector<16x128xf32>
    %c0_24 = arith.constant 0 : index
    %c0_25 = arith.constant 0 : index
    %51 = vector.load %arg7[%c0_24, %c0_25] : memref<128x128xf32, #tpu.memory_space<vmem>>, vector<128x128xf32>
    %cst_26 = arith.constant dense<0.000000e+00> : vector<16x128xf32>
    %52 = tpu.matmul %50, %51, %cst_26 {dimension_numbers = #tpu.dot_dimension_numbers<[1], [0], [0], [1], [0, 0, 1, 1], [], []>} : vector<16x128xf32>, vector<128x128xf32>, vector<16x128xf32> -> vector<16x128xf32>
    %c0_27 = arith.constant 0 : index
    %c0_28 = arith.constant 0 : index
    %53 = vector.load %arg8[%c0_27, %c0_28] : memref<1x128xf32, #tpu.memory_space<vmem>>, vector<1x128xf32>
    %54 = vector.broadcast %53 : vector<1x128xf32> to vector<16x128xf32>
    %55 = arith.addf %52, %54 : vector<16x128xf32>
    %cst_29 = arith.constant 0.000000e+00 : f32
    %56 = vector.broadcast %cst_29 : f32 to vector<16x128xf32>
    %57 = arith.cmpf oge, %55, %56 : vector<16x128xf32>
    %cst_30 = arith.constant 0.00999999977 : f32
    %58 = vector.broadcast %cst_30 : f32 to vector<16x128xf32>
    %59 = arith.mulf %58, %55 : vector<16x128xf32>
    %60 = arith.select %57, %55, %59 : vector<16x128xi1>, vector<16x128xf32>
    %c0_31 = arith.constant 0 : index
    %c0_32 = arith.constant 0 : index
    %61 = vector.load %arg12[%c0_31, %c0_32] : memref<16x128xf32, #tpu.memory_space<vmem>>, vector<16x128xf32>
    tpu.vector_store %arg12[%c0_31, %c0_32], %60 {strides = array<i32>} : memref<16x128xf32, #tpu.memory_space<vmem>>, vector<16x128xf32>,
    %c0_33 = arith.constant 0 : index
    %c0_34 = arith.constant 0 : index
    %62 = vector.load %arg9[%c0_33, %c0_34] : memref<128x128xf32, #tpu.memory_space<vmem>>, vector<128x128xf32>
    %cst_35 = arith.constant dense<0.000000e+00> : vector<2x128xf32>
    %63 = tpu.matmul %11, %62, %cst_35 {dimension_numbers = #tpu.dot_dimension_numbers<[1], [0], [0], [1], [0, 0, 1, 1], [], []>} : vector<2x128xf32>, vector<128x128xf32>, vector<2x128xf32> -> vector<2x128xf32>
    %c0_36 = arith.constant 0 : index
    %c0_37 = arith.constant 0 : index
    %64 = vector.load %arg10[%c0_36, %c0_37] : memref<1x128xf32, #tpu.memory_space<vmem>>, vector<1x128xf32>
    %65 = vector.broadcast %64 : vector<1x128xf32> to vector<2x128xf32>
    %66 = arith.addf %63, %65 : vector<2x128xf32>
    %cst_38 = arith.constant 0.000000e+00 : f32
    %67 = vector.broadcast %cst_38 : f32 to vector<2x128xf32>
    %68 = arith.cmpf oge, %66, %67 : vector<2x128xf32>
    %cst_39 = arith.constant 0.00999999977 : f32
    %69 = vector.broadcast %cst_39 : f32 to vector<2x128xf32>
    %70 = arith.mulf %69, %66 : vector<2x128xf32>
    %71 = arith.select %68, %66, %70 : vector<2x128xi1>, vector<2x128xf32>
    %c0_40 = arith.constant 0 : index
    %c0_41 = arith.constant 0 : index
    %72 = vector.load %arg11[%c0_40, %c0_41] : memref<2x128xf32, #tpu.memory_space<vmem>>, vector<2x128xf32>
    tpu.vector_store %arg11[%c0_40, %c0_41], %71 {strides = array<i32>} : memref<2x128xf32, #tpu.memory_space<vmem>>, vector<2x128xf32>,
    %73 = tpu.iota {dimensions = array<i32: 0>} : vector<8x8xi32>
    %74 = tpu.iota {dimensions = array<i32: 1>} : vector<8x8xi32>
    %75 = arith.cmpi eq, %73, %74 : vector<8x8xi32>
    %76 = arith.extui %75 : vector<8x8xi1> to vector<8x8xi32>
    %77 = arith.sitofp %76 : vector<8x8xi32> to vector<8x8xf32>
    %78 = vector.shape_cast %77 : vector<8x8xf32> to vector<1x8x8xf32>
    %79 = vector.broadcast %47 : vector<2x8x1xf32> to vector<2x8x8xf32>
    %80 = vector.broadcast %78 : vector<1x8x8xf32> to vector<2x8x8xf32>
    %81 = arith.mulf %79, %80 : vector<2x8x8xf32>
    %cst_42 = arith.constant dense<0.000000e+00> : vector<2x8xf32>
    %82 = vector.multi_reduction <add>, %81, %cst_42 [1] : vector<2x8x8xf32> to vector<2x8xf32>
    %83 = vector.shape_cast %82 : vector<2x8xf32> to vector<2x1x8xf32>
    %c0_43 = arith.constant 0 : index
    %c0_44 = arith.constant 0 : index
    %c0_45 = arith.constant 0 : index
    %84 = vector.load %arg13[%c0_43, %c0_44, %c0_45] : memref<2x1x8xf32, #tpu.memory_space<vmem>>, vector<2x1x8xf32>
    tpu.vector_store %arg13[%c0_43, %c0_44, %c0_45], %83 {strides = array<i32>} : memref<2x1x8xf32, #tpu.memory_space<vmem>>, vector<2x1x8xf32>,
    return
  }
}

</mosaic_0001>

<bundles_post_ra>
// kernel: tpu_custom_call.1
= control target key start
LH: loop header
LB: loop body
LE: loop exit
PB: predicated region body
PF: predicated region fallthrough
CT: control target
= control target key end

     0   :  { %19 = vsyncpa [#allocation3], 0  ;;  %s1433_s0 = inlined_call_operand.vmem [shape: f32[2,128], index: 0, kind: input, shape index: {}]   ;;  %s1434_s1 = inlined_call_operand.vmem [shape: f32[16,128], index: 1, kind: input, shape index: {}]   ;;  %s1435_s2 = inlined_call_operand.vmem [shape: s32[2,8,1], index: 2, kind: input, shape index: {}]   ;;  %s1436_s3 = inlined_call_operand.hbm [shape: f32[128,128], index: 3, kind: input, shape index: {}]   ;;  %s1437_s4 = inlined_call_operand.vmem [shape: f32[1,128], index: 4, kind: input, shape index: {}]   ;;  %s1438_s5 = inlined_call_operand.hbm [shape: f32[128,256], index: 5, kind: input, shape index: {}]   ;;  %s1439_s6 = inlined_call_operand.vmem [shape: f32[1,256], index: 6, kind: input, shape index: {}]   ;;  %s1440_s7 = inlined_call_operand.hbm [shape: f32[128,128], index: 7, kind: input, shape index: {}]   ;;  %s1441_s8 = inlined_call_operand.vmem [shape: f32[1,128], index: 8, kind: input, shape index: {}]   ;;  %s1442_s9 = inlined_call_operand.hbm [shape: f32[128,128], index: 9, kind: input, shape index: {}]   ;;  %s1443_s10 = inlined_call_operand.vmem [shape: f32[1,128], index: 10, kind: input, shape index: {}]   ;;  %s1444_s11 = inlined_call_operand.hbm [shape: f32[2,128], index: 11, kind: output, shape index: {0}]   ;;  %s1445_s12 = inlined_call_operand.hbm [shape: f32[16,128], index: 12, kind: output, shape index: {1}]   ;;  %s1446_s13 = inlined_call_operand.hbm [shape: f32[2,1,8], index: 13, kind: output, shape index: {2}]  }
   0x1   :  { %20 = vsyncpa [#allocation6], 0 }
   0x2   :  { %21 = vsyncpa [#allocation9], 0 }
   0x3   :  { %22 = vsyncpa [#allocation4], 0 }
   0x4   :  { %23 = vsyncpa [#allocation12], 0  ;;  %s1158_s25 = smov [#allocation5]   ;;  %s994_s29 = scalar_lea.hbm %s1438_s5, 4096 }
   0x5   :  { %s49_s26 = sshll.u32 %s1158_s25, 4  ;;  %p995_p0 = scmp.ne.s32.totalorder %s1438_s5, %s994_s29  ;;  %s50_s26 = int_to_ptr.vmem [resolvable:$true] %s49_s26 }
   0x6   :  { %p998_p1 = scmp.lt.u32.totalorder %s994_s29, %s1438_s5 }
   0x8   :  { %p1000_p2 = pnand %p998_p1, %p995_p0 }
   0xa   :  { %1003 = shalt.err (!%p1000_p2)
}
   0xb   :  { %s1004_s17 = scalar_lea.vmem %s50_s26, 4096  ;;  %p1009_p4 = scmp.lt.s32.totalorder %s50_s26, %s50_s26 }
   0xc   :  { %p1005_p3 = scmp.ne.s32.totalorder %s50_s26, %s1004_s17  ;;  %p1010_p5 = scmp.lt.s32.totalorder %s1004_s17, %s1004_s17 }
   0xe   :  { %p1011_p6 = por %p1010_p5, %p1009_p4 }
  0x10   :  { %p1012_p7 = pnand %p1011_p6, %p1005_p3 }
  0x12   :  { %1015 = shalt.err (!%p1012_p7)
}
  0x13   :  { %s1159_s18 = smov 256   ;;  %s1160_s19 = smov 16  }
  0x14   :  { %55 = dma.hbm_to_vmem [thread:$0]  %s1438_s5, 4096, %s50_s26, [#allocation6], %s1159_s18, %s1159_s18, %s1160_s19  }
  0x15   :  { %s1161_s22 = smov [#allocation2]   ;;  %s1016_s27 = scalar_lea.hbm %s1436_s3, 2048 }
  0x16   :  { %s35_s23 = sshll.u32 %s1161_s22, 4  ;;  %p1017_p8 = scmp.ne.s32.totalorder %s1436_s3, %s1016_s27  ;;  %s36_s23 = int_to_ptr.vmem [resolvable:$true] %s35_s23 }
  0x17   :  { %p1020_p9 = scmp.lt.u32.totalorder %s1016_s27, %s1436_s3 }
  0x19   :  { %p1022_p10 = pnand %p1020_p9, %p1017_p8 }
  0x1b   :  { %1025 = shalt.err (!%p1022_p10)
}
  0x1c   :  { %s1026_s15 = scalar_lea.vmem %s36_s23, 2048  ;;  %p1031_p12 = scmp.lt.s32.totalorder %s36_s23, %s36_s23 }
  0x1d   :  { %p1027_p11 = scmp.ne.s32.totalorder %s36_s23, %s1026_s15  ;;  %p1032_p13 = scmp.lt.s32.totalorder %s1026_s15, %s1026_s15 }
  0x1f   :  { %p1033_p0 = por %p1032_p13, %p1031_p12 }
  0x21   :  { %p1034_p1 = pnand %p1033_p0, %p1027_p11 }
  0x23   :  { %1037 = shalt.err (!%p1034_p1)
}
  0x24   :  { %s1162_s5 = smov 128   ;;  %s1163_s26 = smov 8  }
  0x25   :  { %41 = dma.hbm_to_vmem [thread:$0]  %s1436_s3, 2048, %s36_s23, [#allocation3], %s1162_s5, %s1162_s5, %s1163_s26  }
  0x26   :  { %s1164_s18 = smov [#allocation7]   ;;  %s1165_s21 = smov [#allocation8]  }
  0x27   :  { %s63_s20 = sshll.u32 %s1164_s18, 4  ;;  %s77_s22 = sshll.u32 %s1165_s21, 4  ;;  %s64_s20 = int_to_ptr.vmem [resolvable:$true] %s63_s20  ;;  %s1273_s22 = int_to_ptr.vmem [resolvable:$true] %s77_s22 }
  0x28   :  { %s1038_s27 = scalar_lea.hbm %s1440_s7, 2048 }
  0x29   :  { %p1039_p2 = scmp.ne.s32.totalorder %s1440_s7, %s1038_s27  ;;  %p1042_p3 = scmp.lt.u32.totalorder %s1038_s27, %s1440_s7 }
  0x2b   :  { %p1044_p4 = pnand %p1042_p3, %p1039_p2 }
  0x2d   :  { %1047 = shalt.err (!%p1044_p4)
}
  0x2e   :  { %s1048_s3 = scalar_lea.vmem %s64_s20, 2048  ;;  %p1053_p6 = scmp.lt.s32.totalorder %s64_s20, %s64_s20 }
  0x2f   :  { %p1049_p5 = scmp.ne.s32.totalorder %s64_s20, %s1048_s3  ;;  %p1054_p7 = scmp.lt.s32.totalorder %s1048_s3, %s1048_s3 }
  0x31   :  { %p1055_p8 = por %p1054_p7, %p1053_p6 }
  0x33   :  { %p1056_p9 = pnand %p1055_p8, %p1049_p5 }
  0x35   :  { %1059 = shalt.err (!%p1056_p9)
}
  0x36   :  { %69 = dma.hbm_to_vmem [thread:$0]  %s1440_s7, 2048, %s64_s20, [#allocation6], %s1162_s5, %s1162_s5, %s1163_s26  }
  0x37   :  { %s1060_s18 = scalar_lea.hbm %s1442_s9, 2048 }
  0x38   :  { %p1061_p10 = scmp.ne.s32.totalorder %s1442_s9, %s1060_s18  ;;  %p1064_p11 = scmp.lt.u32.totalorder %s1060_s18, %s1442_s9 }
  0x3a   :  { %p1066_p12 = pnand %p1064_p11, %p1061_p10 }
  0x3c   :  { %1069 = shalt.err (!%p1066_p12)
}
  0x3d   :  { %s1070_s28 = scalar_lea.vmem %s1273_s22, 2048  ;;  %p1075_p0 = scmp.lt.s32.totalorder %s1273_s22, %s1273_s22 }
  0x3e   :  { %p1071_p13 = scmp.ne.s32.totalorder %s1273_s22, %s1070_s28  ;;  %p1076_p1 = scmp.lt.s32.totalorder %s1070_s28, %s1070_s28 }
  0x40   :  { %p1077_p2 = por %p1076_p1, %p1075_p0 }
  0x42   :  { %p1078_p3 = pnand %p1077_p2, %p1071_p13 }
  0x44   :  { %1081 = shalt.err (!%p1078_p3)
}
  0x45   :  { %83 = dma.hbm_to_vmem [thread:$0]  %s1442_s9, 2048, %s1273_s22, [#allocation9], %s1162_s5, %s1162_s5, %s1163_s26  }
  0x46   :  { %1148 = dma.done.wait [#allocation3], 2048  }
  0x47   :  { %1149 = vsyncadd [#allocation3], 4294965248 }
  0x48   :  { %1150 = dma.done.wait [#allocation6], 6144  }
  0x49   :  { %1151 = vsyncadd [#allocation6], 4294961152 }
  0x4a   :  { %1152 = dma.done.wait [#allocation9], 2048  }
  0x4b   :  { %1153 = vsyncadd [#allocation9], 4294965248  ;;  %v1166_v0 = vmov 0.0|0.0   ;;  %vm1167_vm0 = vmmov 0   ;;  %v1168_v1 = vmov 0.0   ;;  %v101_v2 = vld [vmem:[#allocation2] sm:$0xff] }
  0x4c   :  { %859 = vmatprep.subr.bf16.mxu0 %v1166_v0  ;;  %786 = vmatprep.mubr.msk.f32.mxu0 %vm1167_vm0, %v1168_v1  ;;  %v102_v3 = vld [vmem:[#allocation2 + $0x8] sm:$0xff]  ;;  %v200_v6 = vld [vmem:[#allocation5 + $0x18] sm:$0xff]  ;;  %v197_v7 = vld [vmem:[#allocation5] sm:$0xff]  ;;  %vm373_vm4 = vcmask 1040384   ;;  %vm632_vm10 = vcmask 64512   ;;  %vm647_vm12 = vcmask 57344  }
  0x4d   :  { %305 = vmatprep.mubr.f32.mxu1 %v1168_v1  ;;  %v198_v4 = vld [vmem:[#allocation5 + $0x8] sm:$0xff]  ;;  %v860_v5 = vpack.c.bf16 %v102_v3, %v101_v2  ;;  %v199_v8 = vld [vmem:[#allocation5 + $0x10] sm:$0xff]  ;;  %v104_v12 = vld [vmem:[#allocation2 + $0x18] sm:$0xff] }
  0x4e   :  { %v883_v9 = vpack.c.bf16 %v200_v6, %v198_v4  ;;  %v885_v10 = vpack.c.bf16 %v199_v8, %v197_v7  ;;  %v103_v11 = vld [vmem:[#allocation2 + $0x10] sm:$0xff]  ;;  %v202_v13 = vld [vmem:[#allocation5 + $0x28] sm:$0xff]  ;;  %v204_v15 = vld [vmem:[#allocation5 + $0x38] sm:$0xff] }
  0x4f   :  { %861 = vmatpush3.bf16.msra.mxu0 %v860_v5  ;;  %v863_v14 = vpack.c.bf16 %v104_v12, %v103_v11  ;;  %v201_v16 = vld [vmem:[#allocation5 + $0x20] sm:$0xff]  ;;  %v203_v17 = vld [vmem:[#allocation5 + $0x30] sm:$0xff]  ;;  %v887_v18 = vpack.c.bf16 %v204_v15, %v202_v13  ;;  %v106_v20 = vld [vmem:[#allocation2 + $0x28] sm:$0xff] }
  0x50   :  { %884 = vmatprep.subr.bf16.mxu1 %v883_v9  ;;  %862 = vmatprep.subr.bf16.mxu0 %v1166_v0  ;;  %v105_v19 = vld [vmem:[#allocation2 + $0x20] sm:$0xff]  ;;  %v206_v21 = vld [vmem:[#allocation5 + $0x48] sm:$0xff]  ;;  %v889_v22 = vpack.c.bf16 %v203_v17, %v201_v16  ;;  %v208_v23 = vld [vmem:[#allocation5 + $0x58] sm:$0xff] }
  0x51   :  { %886 = vmatpush1.bf16.msra.mxu1 %v885_v10  ;;  %v891_v24 = vpack.c.bf16 %v208_v23, %v206_v21  ;;  %v205_v25 = vld [vmem:[#allocation5 + $0x40] sm:$0xff]  ;;  %v207_v26 = vld [vmem:[#allocation5 + $0x50] sm:$0xff]  ;;  %v866_v27 = vpack.c.bf16 %v106_v20, %v105_v19  ;;  %v210_v28 = vld [vmem:[#allocation5 + $0x68] sm:$0xff] }
  0x52   :  { %888 = vmatprep.subr.bf16.mxu1 %v887_v18  ;;  %v212_v29 = vld [vmem:[#allocation5 + $0x78] sm:$0xff]  ;;  %v107_v30 = vld [vmem:[#allocation2 + $0x30] sm:$0xff]  ;;  %v893_v32 = vpack.c.bf16 %v207_v26, %v205_v25  ;;  %v209_v34 = vld [vmem:[#allocation5 + $0x60] sm:$0xff] }
  0x53   :  { %864 = vmatpush3.bf16.msra.mxu0 %v863_v14  ;;  %v108_v31 = vld [vmem:[#allocation2 + $0x38] sm:$0xff]  ;;  %v895_v33 = vpack.c.bf16 %v212_v29, %v210_v28  ;;  %v211_v35 = vld [vmem:[#allocation5 + $0x70] sm:$0xff]  ;;  %v214_v37 = vld [vmem:[#allocation5 + $0x88] sm:$0xff] }
  0x54   :  { %865 = vmatprep.subr.bf16.mxu0 %v1166_v0  ;;  %v869_v36 = vpack.c.bf16 %v108_v31, %v107_v30  ;;  %v216_v38 = vld [vmem:[#allocation5 + $0x98] sm:$0xff]  ;;  %v109_v39 = vld [vmem:[#allocation2 + $0x40] sm:$0xff]  ;;  %v110_v40 = vld [vmem:[#allocation2 + $0x48] sm:$0xff]  ;;  %v897_v41 = vpack.c.bf16 %v211_v35, %v209_v34 }
  0x55   :  { %890 = vmatpush1.bf16.msra.mxu1 %v889_v22  ;;  %v899_v42 = vpack.c.bf16 %v216_v38, %v214_v37  ;;  %v213_v43 = vld [vmem:[#allocation5 + $0x80] sm:$0xff]  ;;  %v215_v44 = vld [vmem:[#allocation5 + $0x90] sm:$0xff]  ;;  %v872_v45 = vpack.c.bf16 %v110_v40, %v109_v39  ;;  %v218_v46 = vld [vmem:[#allocation5 + $0xa8] sm:$0xff]  ;;  %v231_v39 = vlaneseq }
  0x56   :  { %892 = vmatprep.subr.bf16.mxu1 %v891_v24  ;;  %v220_v47 = vld [vmem:[#allocation5 + $0xb8] sm:$0xff]  ;;  %v111_v48 = vld [vmem:[#allocation2 + $0x50] sm:$0xff]  ;;  %v901_v50 = vpack.c.bf16 %v215_v44, %v213_v43  ;;  %v217_v52 = vld [vmem:[#allocation5 + $0xa0] sm:$0xff] }
  0x57   :  { %867 = vmatpush3.bf16.msra.mxu0 %v866_v27  ;;  %v112_v49 = vld [vmem:[#allocation2 + $0x58] sm:$0xff]  ;;  %v903_v51 = vpack.c.bf16 %v220_v47, %v218_v46  ;;  %v219_v53 = vld [vmem:[#allocation5 + $0xb0] sm:$0xff]  ;;  %v222_v55 = vld [vmem:[#allocation5 + $0xc8] sm:$0xff]  ;;  %v1342_v40 = vshrl.u32 %v231_v39, 7 }
  0x58   :  { %868 = vmatprep.subr.bf16.mxu0 %v1166_v0  ;;  %v875_v54 = vpack.c.bf16 %v112_v49, %v111_v48  ;;  %v224_v56 = vld [vmem:[#allocation5 + $0xd8] sm:$0xff]  ;;  %v113_v57 = vld [vmem:[#allocation2 + $0x60] sm:$0xff]  ;;  %v114_v58 = vld [vmem:[#allocation2 + $0x68] sm:$0xff]  ;;  %v905_v59 = vpack.c.bf16 %v219_v53, %v217_v52 }
  0x59   :  { %894 = vmatpush1.bf16.msra.mxu1 %v893_v32  ;;  %v907_v60 = vpack.c.bf16 %v224_v56, %v222_v55  ;;  %v221_v61 = vld [vmem:[#allocation5 + $0xc0] sm:$0xff]  ;;  %v223_v62 = vld [vmem:[#allocation5 + $0xd0] sm:$0xff]  ;;  %v878_v63 = vpack.c.bf16 %v114_v58, %v113_v57  ;;  %v226_v2 = vld [vmem:[#allocation5 + $0xe8] sm:$0xff]  ;;  %v1345_v43 = vsub.s32 0, %v1342_v40 }
  0x5a   :  { %896 = vmatprep.subr.bf16.mxu1 %v895_v33  ;;  %v228_v3 = vld [vmem:[#allocation5 + $0xf8] sm:$0xff]  ;;  %v115_v4 = vld [vmem:[#allocation2 + $0x70] sm:$0xff]  ;;  %v909_v6 = vpack.c.bf16 %v223_v62, %v221_v61  ;;  %v225_v8 = vld [vmem:[#allocation5 + $0xe0] sm:$0xff] }
  0x5b   :  { %870 = vmatpush3.bf16.msra.mxu0 %v869_v36  ;;  %v116_v5 = vld [vmem:[#allocation2 + $0x78] sm:$0xff]  ;;  %v911_v7 = vpack.c.bf16 %v228_v3, %v226_v2  ;;  %v227_v9 = vld [vmem:[#allocation5 + $0xf0] sm:$0xff]  ;;  %v526_v12 = vld [vmem:[#allocation8] sm:$0xff] }
  0x5c   :  { %871 = vmatprep.subr.bf16.mxu0 %v1166_v0  ;;  %v881_v10 = vpack.c.bf16 %v116_v5, %v115_v4  ;;  %v913_v11 = vpack.c.bf16 %v227_v9, %v225_v8  ;;  %v527_v13 = vld [vmem:[#allocation8 + $0x8] sm:$0xff]  ;;  %v98_v14 = vld [vmem:[%s1433_s0] sm:$0x3]  ;;  %v528_v17 = vld [vmem:[#allocation8 + $0x10] sm:$0xff] }
  0x5d   :  { %898 = vmatpush1.bf16.msra.mxu1 %v897_v41  ;;  %v99_v15 = vld [vmem:[%s1434_s1] sm:$0xff]  ;;  %v948_v16 = vpack.c.bf16 %v527_v13, %v526_v12  ;;  %v529_v18 = vld [vmem:[#allocation8 + $0x18] sm:$0xff]  ;;  %v100_v19 = vld [vmem:[%s1434_s1 + $0x8] sm:$0xff]  ;;  %v1169_v41 = vmov 1966171168  }
  0x5e   :  { %900 = vmatprep.subr.bf16.mxu1 %v899_v42  ;;  %v951_v20 = vpack.c.bf16 %v529_v18, %v528_v17  ;;  %v530_v21 = vld [vmem:[#allocation8 + $0x20] sm:$0xff]  ;;  %v531_v22 = vld [vmem:[#allocation8 + $0x28] sm:$0xff]  ;;  %v532_v24 = vld [vmem:[#allocation8 + $0x30] sm:$0xff]  ;;  %v332_v42 = vunpack.c.l.s4 %v1169_v41 }
  0x5f   :  { %873 = vmatpush3.bf16.msra.mxu0 %v872_v45  ;;  %v954_v23 = vpack.c.bf16 %v531_v22, %v530_v21  ;;  %v533_v25 = vld [vmem:[#allocation8 + $0x38] sm:$0xff]  ;;  %v534_v27 = vld [vmem:[#allocation8 + $0x40] sm:$0xff]  ;;  %v535_v28 = vld [vmem:[#allocation8 + $0x48] sm:$0xff]  ;;  %v237_v45 = vsub.s32 1, %v1342_v40 }
  0x60   :  { %874 = vmatprep.subr.bf16.mxu0 %v1166_v0  ;;  %v957_v26 = vpack.c.bf16 %v533_v25, %v532_v24  ;;  %v960_v29 = vpack.c.bf16 %v535_v28, %v534_v27  ;;  %v536_v30 = vld [vmem:[#allocation8 + $0x50] sm:$0xff]  ;;  %v537_v31 = vld [vmem:[#allocation8 + $0x58] sm:$0xff]  ;;  %v538_v33 = vld [vmem:[#allocation8 + $0x60] sm:$0xff]  ;;  %v333_v46 = vunpack.c.0.s8 %v332_v42 }
  0x61   :  { %902 = vmatpush1.bf16.msra.mxu1 %v901_v50  ;;  %v963_v32 = vpack.c.bf16 %v537_v31, %v536_v30  ;;  %v539_v34 = vld [vmem:[#allocation8 + $0x68] sm:$0xff]  ;;  %v540_v36 = vld [vmem:[#allocation8 + $0x70] sm:$0xff]  ;;  %v541_v37 = vld [vmem:[#allocation8 + $0x78] sm:$0xff] }
  0x62   :  { %904 = vmatprep.subr.bf16.mxu1 %v903_v51  ;;  %v966_v35 = vpack.c.bf16 %v539_v34, %v538_v33  ;;  %v969_v38 = vpack.c.bf16 %v541_v37, %v540_v36  ;;  %v229_v44 = vld [vmem:[%s1439_s6] sm:$0x3]  ;;  %v336_v53 = vsub.s32 %v333_v46, %v1342_v40  ;;  %v421_v21 = vld [vmem:[#allocation7 + $0x8] sm:$0xff]  ;;  %v422_v22 = vld [vmem:[#allocation7 + $0x10] sm:$0xff] }
  0x63   :  { %876 = vmatpush3.bf16.msra.mxu0 %v875_v54  ;;  %v234_v47 = vrot.slane %v229_v44, %v1345_v43  ;;  %v238_v49 = vrot.slane %v229_v44, %v237_v45  ;;  %v423_v24 = vld [vmem:[#allocation7 + $0x18] sm:$0xff]  ;;  %v425_v27 = vld [vmem:[#allocation7 + $0x28] sm:$0xff] }
  0x64   :  { %877 = vmatprep.subr.bf16.mxu0 %v1166_v0  ;;  %v919_v25 = vpack.c.bf16 %v423_v24, %v422_v22  ;;  %v427_v30 = vld [vmem:[#allocation7 + $0x38] sm:$0xff]  ;;  %v429_v33 = vld [vmem:[#allocation7 + $0x48] sm:$0xff] }
  0x65   :  { %906 = vmatpush1.bf16.msra.mxu1 %v905_v59  ;;  %v431_v36 = vld [vmem:[#allocation7 + $0x58] sm:$0xff]  ;;  %v433_v41 = vld [vmem:[#allocation7 + $0x68] sm:$0xff] }
  0x66   :  { %908 = vmatprep.subr.bf16.mxu1 %v907_v60 }
  0x67   :  { %879 = vmatpush3.bf16.msra.mxu0 %v878_v63 }
  0x68   :  { %880 = vmatprep.subr.bf16.mxu0 %v1166_v0 }
  0x69   :  { %910 = vmatpush1.bf16.msra.mxu1 %v909_v6 }
  0x6a   :  { %912 = vmatprep.subr.bf16.mxu1 %v911_v7 }
  0x6b   :  { %882 = vmatpush3.bf16.msra.mxu0 %v881_v10 }
  0x6d   :  { %914 = vmatpush1.bf16.msra.mxu1 %v913_v11 }
  0x6e   :  { %787 = vmatmul.mubr.f32.vlgmr.msra.gmra.mrb[0].mxu0 %v98_v14  ;;  %947 = vmatprep.subr.bf16.mxu1 %v1166_v0 }
  0x70   :  { %306 = vmatmul.mubr.f32.vlgmr.msra.gmra.mrb[0].mxu1 %v99_v15 }
  0x71   :  { %311 = vmatprep.mubr.f32.mxu1 %v1168_v1  ;;  %949 = vmatpush3.bf16.msra.mxu1 %v948_v16 }
  0x72   :  { %950 = vmatprep.subr.bf16.mxu1 %v1166_v0 }
  0x74   :  { %312 = vmatmul.mubr.f32.gmra.mrb[2].mxu1 %v100_v19  ;;  %v1170_v19 = vmov 0  }
  0x75   :  { %952 = vmatpush3.bf16.msra.mxu1 %v951_v20  ;;  %856 = vmatprep.mubr.msk.f32.mxu1 %vm1167_vm0, %v1168_v1  ;;  %v420_v20 = vld [vmem:[#allocation7] sm:$0xff] }
  0x76   :  { %953 = vmatprep.subr.bf16.mxu1 %v1166_v0  ;;  %988 = vset.pattern.permute.xlu0 %v1170_v19 }
  0x77   :  { %989 = vset.pattern.permute.xlu1 %v1170_v19 }
  0x79   :  { %955 = vmatpush3.bf16.msra.mxu1 %v954_v23  ;;  %v915_v23 = vpack.c.bf16 %v421_v21, %v420_v20 }
  0x7a   :  { %956 = vmatprep.subr.bf16.mxu1 %v1166_v0 }
  0x7b   :  { %916 = vmatprep.subr.bf16.mxu0 %v915_v23 }
  0x7c   :  { %918 = vmatpush3.bf16.msra.mxu0 %v915_v23 }
  0x7d   :  { %958 = vmatpush3.bf16.msra.mxu1 %v957_v26  ;;  %v424_v26 = vld [vmem:[#allocation7 + $0x20] sm:$0xff]  ;;  %920 = vmatprep.subr.bf16.mxu0 %v919_v25 }
  0x7e   :  { %959 = vmatprep.subr.bf16.mxu1 %v1166_v0  ;;  %v923_v28 = vpack.c.bf16 %v425_v27, %v424_v26 }
  0x80   :  { %922 = vmatpush3.bf16.msra.mxu0 %v919_v25 }
  0x81   :  { %961 = vmatpush3.bf16.msra.mxu1 %v960_v29  ;;  %v426_v29 = vld [vmem:[#allocation7 + $0x30] sm:$0xff]  ;;  %924 = vmatprep.subr.bf16.mxu0 %v923_v28 }
  0x82   :  { %962 = vmatprep.subr.bf16.mxu1 %v1166_v0  ;;  %v927_v31 = vpack.c.bf16 %v427_v30, %v426_v29 }
  0x84   :  { %926 = vmatpush3.bf16.msra.mxu0 %v923_v28 }
  0x85   :  { %964 = vmatpush3.bf16.msra.mxu1 %v963_v32  ;;  %v428_v32 = vld [vmem:[#allocation7 + $0x40] sm:$0xff]  ;;  %928 = vmatprep.subr.bf16.mxu0 %v927_v31 }
  0x86   :  { %965 = vmatprep.subr.bf16.mxu1 %v1166_v0  ;;  %v931_v34 = vpack.c.bf16 %v429_v33, %v428_v32 }
  0x88   :  { %930 = vmatpush3.bf16.msra.mxu0 %v927_v31 }
  0x89   :  { %967 = vmatpush3.bf16.msra.mxu1 %v966_v35  ;;  %v430_v35 = vld [vmem:[#allocation7 + $0x50] sm:$0xff]  ;;  %932 = vmatprep.subr.bf16.mxu0 %v931_v34 }
  0x8a   :  { %968 = vmatprep.subr.bf16.mxu1 %v1166_v0  ;;  %v698_v0 = vld [vmem:[%s1437_s4] ss:$0 sm:$0xff]  ;;  %v935_v37 = vpack.c.bf16 %v431_v36, %v430_v35 }
  0x8c   :  { %934 = vmatpush3.bf16.msra.mxu0 %v931_v34 }
  0x8d   :  { %970 = vmatpush3.bf16.msra.mxu1 %v969_v38  ;;  %v432_v38 = vld [vmem:[#allocation7 + $0x60] sm:$0xff]  ;;  %936 = vmatprep.subr.bf16.mxu0 %v935_v37 }
  0x8e   :  { %v939_v42 = vpack.c.bf16 %v433_v41, %v432_v38 }
  0x90   :  { %938 = vmatpush3.bf16.msra.mxu0 %v935_v37 }
  0x91   :  { %940 = vmatprep.subr.bf16.mxu0 %v939_v42 }
  0x94   :  { %942 = vmatpush3.bf16.msra.mxu0 %v939_v42 }
 0x141   :  { %v190_v48 = vpop.f32.mrb[0].mxu0 }
 0x142   :  { %v191_v50 = vadd.f32 %v698_v0, %v190_v48  ;;  %v788_v51 = vpop.f32.mrb[1].mxu0 }
 0x143   :  { %v307_v52 = vpop.f32.mrb[0].mxu1 }
 0x144   :  { %vm194_vm1 = vcmp.ge.f32.partialorder %v191_v50, 0.0  ;;  %v195_v54 = vmul.f32 0.01, %v191_v50  ;;  %v308_v55 = vadd.f32 %v307_v52, %v234_v47  ;;  %v309_v56 = vpop.f32.mrb[1].mxu1 }
 0x145   :  { %v1356_v57 = vadd.f32 %v309_v56, %v238_v49 }
 0x146   :  { %v196_v58 = vsel %vm194_vm1, %v191_v50, %v195_v54  ;;  %v322_v59 = vmul.f32 0.01, %v308_v55  ;;  %vm318_vm2 = vcmp.ge.f32.partialorder %v308_v55, 0.0 }
 0x147   :  { %v313_v60 = vpop.f32.mrb[2].mxu1  ;;  %857 = vmatmul.mubr.f32.vlgmr.msra.gmra.mrb[4].mxu1 %v196_v58  ;;  %v337_v61 = vrot.slane %v196_v58, %v336_v53  ;;  %v403_v58 = vld [vmem:[%s1435_s2 + $0x8] sm:$0xff]  ;;  %vm319_vm9 = vcmp.ge.f32.partialorder %v1356_v57, 0.0 }
 0x148   :  { %v314_v62 = vadd.f32 %v313_v60, %v234_v47  ;;  %v315_v63 = vpop.f32.mrb[3].mxu1  ;;  %v326_v2 = vsel %vm318_vm2, %v308_v55, %v322_v59  ;;  %vm405_vm6 = vcmp.ne.s32.totalorder %v403_v58, 0 }
 0x149   :  { %v1358_v3 = vadd.f32 %v315_v63, %v238_v49  ;;  %v380_v4 = vmul.f32 %v326_v2, %v326_v2  ;;  %v345_v5 = vrot.slane %v337_v61, %v336_v53  ;;  %v338_v6 = vcombine.high %v337_v61, %v337_v61  ;;  %v434_v61 = vld [vmem:[#allocation7 + $0x70] sm:$0xff] }
 0x14a   :  { %v324_v7 = vmul.f32 0.01, %v314_v62  ;;  %vm320_vm3 = vcmp.ge.f32.partialorder %v314_v62, 0.0 }
 0x14b   :  { %382 = vadd.xlane.f32.xlu1 %v380_v4  ;;  %v371_v8 = vmul.f32 %v345_v5, %v345_v5  ;;  %v352_v9 = vrot.slane %v338_v6, %v336_v53  ;;  %v358_v10 = vrot.slane %v345_v5, %v1345_v43  ;;  %v402_v53 = vld [vmem:[%s1435_s2] sm:$0xff]  ;;  %vm321_vm11 = vcmp.ge.f32.partialorder %v1358_v3, 0.0  ;;  %s1171_s2 = smov [#allocation10]  }
 0x14c   :  { %v328_v11 = vsel %vm320_vm3, %v314_v62, %v324_v7  ;;  %vm404_vm5 = vcmp.ne.s32.totalorder %v402_v53, 0  ;;  %v435_v62 = vld [vmem:[#allocation7 + $0x78] sm:$0xff]  ;;  %v700_v5 = vld [vmem:[%s1443_s10] ss:$0 sm:$0xff]  ;;  %s656_s10 = sshll.u32 %s1171_s2, 4  ;;  %s657_s10 = int_to_ptr.vmem [resolvable:$true] %s656_s10 }
 0x14d   :  { %v381_v12 = vmul.f32 %v328_v11, %v328_v11  ;;  %v374_v13 = vsel %vm373_vm4, %v371_v8, 0.0  ;;  %v372_v14 = vmul.f32 %v352_v9, %v352_v9  ;;  %v362_v15 = vrot.slane %v352_v9, %v1345_v43  ;;  %s1082_s24 = scalar_lea.vmem %s657_s10, 32  ;;  %p1087_p5 = scmp.lt.s32.totalorder %s657_s10, %s657_s10 }
 0x14e   :  { %375 = vadd.xlane.f32.xlu0 %v374_v13  ;;  %v365_v16 = vmul.f32 %v358_v10, %v326_v2  ;;  %v943_v2 = vpack.c.bf16 %v435_v62, %v434_v61  ;;  %p1083_p4 = scmp.ne.s32.totalorder %s657_s10, %s1082_s24  ;;  %p1088_p6 = scmp.lt.s32.totalorder %s1082_s24, %s1082_s24 }
 0x14f   :  { %384 = vadd.xlane.f32.xlu1 %v381_v12  ;;  %v366_v17 = vmul.f32 %v362_v15, %v328_v11  ;;  %v377_v18 = vsel %vm373_vm4, %v372_v14, 0.0  ;;  %v626_v11 = vand.u32 127, %v231_v39  ;;  %v323_v12 = vmul.f32 0.01, %v1356_v57 }
 0x150   :  { %944 = vmatprep.subr.bf16.mxu0 %v943_v2  ;;  %v325_v14 = vmul.f32 0.01, %v1358_v3  ;;  %p1089_p7 = por %p1088_p6, %p1087_p5 }
 0x151   :  { %946 = vmatpush3.bf16.msra.mxu0 %v943_v2  ;;  %vm627_vm8 = vcmp.eq.s32.totalorder %v1342_v40, %v626_v11  ;;  %v327_v15 = vsel %vm319_vm9, %v1356_v57, %v323_v12 }
 0x152   :  { %378 = vadd.xlane.f32.xlu0 %v377_v18  ;;  %v701_v13 = vsel %vm627_vm8, 1.0, %v1168_v1  ;;  %v329_v40 = vsel %vm321_vm11, %v1358_v3, %v325_v14  ;;  %p1090_p8 = pnand %p1089_p7, %p1083_p4 }
 0x153   :  { %369 = vadd.xlane.f32.xlu1 %v366_v17 }
 0x156   :  { %367 = vadd.xlane.f32.xlu0 %v365_v16 }
 0x1d8   :  { %v383_v44 = vpop.xlane.xlu1 %382 }
 0x1db   :  { %v376_v45 = vpop.xlane.xlu0 %375 }
 0x1dc   :  { %v389_v0 = vrot.slane %v376_v45, %v1345_v43  ;;  %v385_v50 = vpop.xlane.xlu1 %384 }
 0x1de   :  { %v394_v46 = vmul.f32 %v389_v0, %v383_v44 }
 0x1df   :  { %v379_v47 = vpop.xlane.xlu0 %378 }
 0x1e0   :  { %v396_v48 = vmax.f32 %v394_v46, 1e-16  ;;  %v393_v49 = vrot.slane %v379_v47, %v1345_v43  ;;  %v370_v43 = vpop.xlane.xlu1 %369 }
 0x1e2   :  { %990 = vrsqrt.f32 %v396_v48  ;;  %v395_v51 = vmul.f32 %v393_v49, %v385_v50 }
 0x1e3   :  { %v368_v55 = vpop.xlane.xlu0 %367 }
 0x1e4   :  { %v397_v52 = vmax.f32 %v395_v51, 1e-16 }
 0x1e6   :  { %992 = vrsqrt.f32 %v397_v52 }
 0x1ec   :  { %v991_v54 = vpop.eup %990 }
 0x1ed   :  { %v400_v56 = vmul.f32 %v991_v54, %v368_v55 }
 0x1ef   :  { %v406_v59 = vsel %vm404_vm5, 1e-09, %v400_v56 }
 0x1f0   :  { %v993_v60 = vpop.eup %992  ;;  %410 = vperm.xlu0 %988, %v406_v59  }
 0x1f1   :  { %v401_v63 = vmul.f32 %v993_v60, %v370_v43 }
 0x1f3   :  { %v407_v4 = vsel %vm405_vm6, 1e-09, %v401_v63 }
 0x1f4   :  { %415 = vperm.xlu1 %989, %v407_v4  }
 0x21a   :  { %v615_v6 = vpop.f32.mrb[4].mxu1 }
 0x21b   :  { %v616_v7 = vadd.f32 %v700_v5, %v615_v6  ;;  %v858_v8 = vpop.f32.mrb[5].mxu1 }
 0x21d   :  { %v620_v9 = vmul.f32 0.01, %v616_v7  ;;  %vm619_vm7 = vcmp.ge.f32.partialorder %v616_v7, 0.0 }
 0x21f   :  { %v621_v10 = vsel %vm619_vm7, %v616_v7, %v620_v9 }
 0x220   :  { %622 = vst [vmem:[#allocation10] sm:$0x3] %v621_v10 }
 0x26f   :  { %v411_v16 = vpop.permute.xlu0 %410 }
 0x270   :  { %v418_v17 = vmul.f32 %v411_v16, %v327_v15  ;;  %v630_v18 = vmul.f32 %v701_v13, %v411_v16 }
 0x272   :  { %v633_v19 = vsel %vm632_vm10, %v630_v18, 0.0  ;;  %821 = vmatprep.mubr.f32.mxu0 %v418_v17 }
 0x273   :  { %v634_v39 = vrot.slane %v633_v19, 4  ;;  %v416_v20 = vpop.permute.xlu1 %415 }
 0x274   :  { %v419_v21 = vmul.f32 %v416_v20, %v329_v40  ;;  %v631_v22 = vmul.f32 %v701_v13, %v416_v20 }
 0x275   :  { %v635_v23 = vadd.f32 %v634_v39, %v633_v19 }
 0x276   :  { %v640_v1 = vsel %vm632_vm10, %v631_v22, 0.0  ;;  %822 = vmatmul.mubr.f32.vlgmr.msra.gmra.mrb[2].mxu0 %v419_v21 }
 0x277   :  { %v636_v24 = vrot.slane %v635_v23, 2  ;;  %v641_v25 = vrot.slane %v640_v1, 4 }
 0x279   :  { %v637_v57 = vadd.f32 %v636_v24, %v635_v23  ;;  %v642_v26 = vadd.f32 %v641_v25, %v640_v1 }
 0x27b   :  { %v638_v27 = vrot.slane %v637_v57, 1  ;;  %v643_v28 = vrot.slane %v642_v26, 2 }
 0x27d   :  { %v639_v29 = vadd.f32 %v638_v27, %v637_v57  ;;  %v644_v30 = vadd.f32 %v643_v28, %v642_v26 }
 0x27f   :  { %v645_v31 = vrot.slane %v644_v30, 1  ;;  %648 = vst.msk [vmem:[#allocation13] sm:$0x1] %vm647_vm12, %v639_v29 }
 0x281   :  { %v646_v32 = vadd.f32 %v645_v31, %v644_v30 }
 0x283   :  { %649 = vst.msk [vmem:[#allocation13 + $0x1] sm:$0x1] %vm647_vm12, %v646_v32 }
 0x284   :  { %1093 = shalt.err (!%p1090_p8)
}
 0x285   :  { %s1094_s28 = scalar_lea.hbm %s1444_s11, 32 }
 0x286   :  { %p1095_p9 = scmp.ne.s32.totalorder %s1444_s11, %s1094_s28  ;;  %p1098_p10 = scmp.lt.u32.totalorder %s1094_s28, %s1444_s11 }
 0x288   :  { %p1100_p11 = pnand %p1098_p10, %p1095_p9 }
 0x28a   :  { %1103 = shalt.err (!%p1100_p11)
}
 0x28b   :  { %659 = dma.vmem_to_hbm [thread:$0]  %s657_s10, 32, %s1444_s11, [#allocation4]   ;;  %v699_v3 = vld [vmem:[%s1441_s8] ss:$0 sm:$0xff] }
 0x28c   :  { %s1172_s0 = smov [#allocation11]   ;;  %s1173_s23 = smov [#allocation13]  }
 0x28d   :  { %s665_s1 = sshll.u32 %s1172_s0, 4  ;;  %s677_s15 = sshll.u32 %s1173_s23, 4  ;;  %s666_s1 = int_to_ptr.vmem [resolvable:$true] %s665_s1  ;;  %s1397_s15 = int_to_ptr.vmem [resolvable:$true] %s677_s15 }
 0x28e   :  { %s1104_s8 = scalar_lea.vmem %s666_s1, 256  ;;  %p1109_p13 = scmp.lt.s32.totalorder %s666_s1, %s666_s1 }
 0x28f   :  { %p1105_p12 = scmp.ne.s32.totalorder %s666_s1, %s1104_s8  ;;  %p1110_p0 = scmp.lt.s32.totalorder %s1104_s8, %s1104_s8 }
 0x291   :  { %p1111_p1 = por %p1110_p0, %p1109_p13 }
 0x293   :  { %p1112_p2 = pnand %p1111_p1, %p1105_p12 }
 0x349   :  { %v823_v33 = vpop.f32.mrb[2].mxu0 }
 0x34a   :  { %v515_v34 = vadd.f32 %v823_v33, %v699_v3  ;;  %v509_v35 = vpop.f32.mrb[3].mxu0 }
 0x34b   :  { %v510_v36 = vadd.f32 %v699_v3, %v509_v35 }
 0x34c   :  { %vm519_vm13 = vcmp.ge.f32.partialorder %v515_v34, 0.0  ;;  %v521_v37 = vmul.f32 0.01, %v515_v34 }
 0x34d   :  { %vm518_vm14 = vcmp.ge.f32.partialorder %v510_v36, 0.0  ;;  %v520_v38 = vmul.f32 0.01, %v510_v36 }
 0x34e   :  { %v523_v41 = vsel %vm519_vm13, %v515_v34, %v521_v37 }
 0x34f   :  { %v522_v42 = vsel %vm518_vm14, %v510_v36, %v520_v38  ;;  %525 = vst [vmem:[#allocation11 + $0x8] sm:$0xff] %v523_v41 }
 0x350   :  { %524 = vst [vmem:[#allocation11] sm:$0xff] %v522_v42 }
 0x351   :  { %1115 = shalt.err (!%p1112_p2)
}
 0x352   :  { %s1116_s6 = scalar_lea.hbm %s1445_s12, 256 }
 0x353   :  { %p1117_p3 = scmp.ne.s32.totalorder %s1445_s12, %s1116_s6  ;;  %p1120_p4 = scmp.lt.u32.totalorder %s1116_s6, %s1445_s12 }
 0x355   :  { %p1122_p5 = pnand %p1120_p4, %p1117_p3 }
 0x357   :  { %1125 = shalt.err (!%p1122_p5)
}
 0x358   :  { %671 = dma.vmem_to_hbm [thread:$0]  %s666_s1, 256, %s1445_s12, [#allocation12], %s1162_s5, %s1162_s5, %s1163_s26  }
 0x359   :  { %s1126_s24 = scalar_lea.vmem %s1397_s15, 32  ;;  %p1131_p7 = scmp.lt.s32.totalorder %s1397_s15, %s1397_s15 }
 0x35a   :  { %p1127_p6 = scmp.ne.s32.totalorder %s1397_s15, %s1126_s24  ;;  %p1132_p8 = scmp.lt.s32.totalorder %s1126_s24, %s1126_s24 }
 0x35c   :  { %p1133_p9 = por %p1132_p8, %p1131_p7 }
 0x35e   :  { %p1134_p10 = pnand %p1133_p9, %p1127_p6 }
 0x360   :  { %1137 = shalt.err (!%p1134_p10)
}
 0x361   :  { %s1138_s28 = scalar_lea.hbm %s1446_s13, 32 }
 0x362   :  { %p1139_p11 = scmp.ne.s32.totalorder %s1446_s13, %s1138_s28  ;;  %p1142_p12 = scmp.lt.u32.totalorder %s1138_s28, %s1446_s13 }
 0x364   :  { %p1144_p13 = pnand %p1142_p12, %p1139_p11 }
 0x366   :  { %1147 = shalt.err (!%p1144_p13)
}
 0x367   :  { %s1174_s12 = smov 1  }
 0x368   :  { %683 = dma.vmem_to_hbm [thread:$0]  %s1397_s15, 32, %s1446_s13, [#allocation12], %s1160_s19, %s1160_s19, %s1174_s12  }
 0x369   :  { %1154 = dma.done.wait [#allocation4], 32  }
 0x36a   :  { %1155 = vsyncadd [#allocation4], 4294967264 }
 0x36b   :  { %1156 = dma.done.wait [#allocation12], 288  }
 0x36c   :  { %1157 = vsyncadd [#allocation12], 4294967008 }
 0x36d   :  { %693 = vsyncpa [#allocation3], 1 }
 0x36e   :  { %694 = vsyncpa [#allocation6], 1 }
 0x36f   :  { %695 = vsyncpa [#allocation9], 1 }
 0x370   :  { %696 = vsyncpa [#allocation4], 1 }
 0x371   :  { %697 = vsyncpa [#allocation12], 1 }

</bundles_post_ra>
